<compile_context>
chip_gen: v7x
topology: tpu7x:2x2x1
jax: 0.10.0
libtpu: 0.0.40
codegen_flags: <defaults>
</compile_context>

<pallas_src>
import functools

import jax
import jax.numpy as jnp
from jax.experimental import pallas as pl
from jax.experimental.pallas import tpu as pltpu


def _leaky_relu(x, slope=0.01):
    # matches torch.nn.LeakyReLU default negative_slope=0.01
    return jnp.where(x > 0, x, slope * x)


def _mlp_fpsigmoid_kernel(
    x_ref,
    w1_ref, b1_ref,
    w2_ref, b2_ref,
    w3_ref, b3_ref,
    w4_ref, b4_ref,
    w5_ref, b5_ref,
    w6_ref, b6_ref,
    a_ref, bscale_ref,
    o_ref,
    *, final_is_vpu,
):
    h = x_ref[...]  # (TM, d0) f32

    def lin(h, w_ref, b_ref):
        # bf16 operands on the MXU, f32 accumulation; bias add stays f32.
        return (
            jnp.dot(h.astype(jnp.bfloat16), w_ref[...],
                    preferred_element_type=jnp.float32)
            + b_ref[...]
        )

    h = _leaky_relu(lin(h, w1_ref, b1_ref))
    h = _leaky_relu(lin(h, w2_ref, b2_ref))
    h = _leaky_relu(lin(h, w3_ref, b3_ref))
    h = _leaky_relu(lin(h, w4_ref, b4_ref))
    h = _leaky_relu(lin(h, w5_ref, b5_ref))

    if final_is_vpu:
        # num_classes == 1: an MXU pass with N=1 wastes almost the whole
        # result path; do a VPU multiply + lane reduction instead.
        # w6 arrives pre-transposed as (1, d5) f32.
        y = jnp.sum(h * w6_ref[...], axis=-1, keepdims=True) + b6_ref[...]
    else:
        y = (
            jnp.dot(h.astype(jnp.bfloat16), w6_ref[...].astype(jnp.bfloat16),
                    preferred_element_type=jnp.float32)
            + b6_ref[...]
        )

    a = a_ref[0]          # learnable scalar a (init 0.001)
    bs = bscale_ref[0]    # learnable scalar b (init 0.999)
    o_ref[...] = jax.nn.sigmoid(bs * y - a)


def _round_up(x, m):
    return ((x + m - 1) // m) * m


def _pad_lane_dim(d):
    # Feature dims > 128 are padded to a multiple of 128 (removes masked-lane
    # work). Dims <= 128 already fit one lane tile and equal the full array dim.
    return d if d <= 128 else _round_up(d, 128)


def _pad2d(arr, rows, cols):
    return jnp.pad(arr, ((0, rows - arr.shape[0]), (0, cols - arr.shape[1])))


def mlp_fpsigmoid(x, params, *, tm_max=512):
    """params = (w1,b1,...,w6,b6,a,b). Weights are (in,out); biases are (1,out)."""
    (w1, b1, w2, b2, w3, b3, w4, b4, w5, b5, w6, b6, a, bscale) = params

    batch, d0 = x.shape
    num_classes = w6.shape[1]

    # ---- pad hidden feature dims to lane-friendly sizes, cast MXU weights ----
    out_dims = [w1.shape[1], w2.shape[1], w3.shape[1], w4.shape[1], w5.shape[1]]
    pdims = [d0] + [_pad_lane_dim(d) for d in out_dims]

    pws, pbs = [], []
    for i, (w, b) in enumerate(zip([w1, w2, w3, w4, w5], [b1, b2, b3, b4, b5])):
        pin, pout = pdims[i], pdims[i + 1]
        pws.append(_pad2d(w, pin, pout).astype(jnp.bfloat16))  # MXU operand
        pbs.append(_pad2d(b, 1, pout))                          # bias stays f32

    final_is_vpu = (num_classes == 1)
    if final_is_vpu:
        w6_in = _pad2d(w6, pdims[5], num_classes).T   # (1, pd5), f32 for VPU reduce
    else:
        w6_in = _pad2d(w6, pdims[5], num_classes)     # (pd5, nc), cast in kernel
    b6_in = b6                                         # (1, nc) f32

    # ---- batch grid: TM rows per step, weights stay VMEM-resident ------------
    tm = min(tm_max, _round_up(batch, 8))
    padded_batch = _round_up(batch, tm)
    if padded_batch != batch:
        x = jnp.pad(x, ((0, padded_batch - batch), (0, 0)))
    grid = (padded_batch // tm,)

    def resident(shape):
        # Full-array block whose index never moves -> fetched once, kept in VMEM.
        return pl.BlockSpec(shape, lambda i, _n=len(shape): (0,) * _n)

    in_specs = [pl.BlockSpec((tm, d0), lambda i: (i, 0))]
    operands = [x]
    for w, b in zip(pws, pbs):
        in_specs += [resident(w.shape), resident(b.shape)]
        operands += [w, b]
    in_specs += [resident(w6_in.shape), resident(b6_in.shape)]
    operands += [w6_in, b6_in]
    # learnable sigmoid scalars a, b live in SMEM
    in_specs += [pl.BlockSpec(memory_space=pltpu.SMEM),
                 pl.BlockSpec(memory_space=pltpu.SMEM)]
    operands += [a, bscale]

    out = pl.pallas_call(
        functools.partial(_mlp_fpsigmoid_kernel, final_is_vpu=final_is_vpu),
        out_shape=jax.ShapeDtypeStruct((padded_batch, num_classes), jnp.float32),
        grid=grid,
        in_specs=in_specs,
        out_specs=pl.BlockSpec((tm, num_classes), lambda i: (i, 0)),
        compiler_params=pltpu.CompilerParams(
            dimension_semantics=("parallel",)),   # v7x megacore; no-op on v5e/v6e
    )(*operands)

    return out[:batch]


def init_params(key, input_size, num_classes=1):
    """Deterministic init mimicking torch.nn.Linear default (uniform +-1/sqrt(fan_in))."""
    dims = [
        (input_size, input_size * 5),
        (input_size * 5, input_size * 5),
        (input_size * 5, input_size * 2),
        (input_size * 2, input_size),
        (input_size, input_size // 2),
        (input_size // 2, num_classes),
    ]
    params = []
    for (d_in, d_out) in dims:
        key, kw, kb = jax.random.split(key, 3)
        bound = 1.0 / jnp.sqrt(d_in)
        w = jax.random.uniform(kw, (d_in, d_out), jnp.float32, -bound, bound)
        b = jax.random.uniform(kb, (1, d_out), jnp.float32, -bound, bound)
        params += [w, b]
    # learnable sigmoid params a, b (as in the torch module __init__)
    a = jnp.array([0.001], dtype=jnp.float32)
    b = jnp.array([0.999], dtype=jnp.float32)
    params += [a, b]
    return tuple(params)


def _reference(x, params):
    """Pure-JAX f32 reference for sanity check."""
    (w1, b1, w2, b2, w3, b3, w4, b4, w5, b5, w6, b6, a, bscale) = params
    h = x
    for (w, b) in [(w1, b1), (w2, b2), (w3, b3), (w4, b4), (w5, b5)]:
        h = _leaky_relu(h @ w + b)
    y = h @ w6 + b6
    return jax.nn.sigmoid(bscale[0] * y - a[0])


if __name__ == "__main__":
    input_size = 32
    batch = 8
    num_classes = 1

    key = jax.random.PRNGKey(0)
    kx, kp = jax.random.split(key)
    x = jax.random.normal(kx, (batch, input_size), dtype=jnp.float32)
    params = init_params(kp, input_size, num_classes)

    out = jax.block_until_ready(mlp_fpsigmoid(x, params))
    ref = _reference(x, params)

    assert out.shape == (batch, num_classes)
    # bf16 MXU operands (f32 accumulate) vs. the f32 reference -> loosened tol
    assert jnp.allclose(out, ref, atol=2e-2, rtol=2e-2), float(
        jnp.max(jnp.abs(out - ref)))

    print("KERNEL_OK")
</pallas_src>

<mosaic_0001>
module attributes {stable_mosaic.version = 11 : i64} {
  func.func @_mlp_fpsigmoid_kernel(%arg0: i32, %arg1: memref<8x32xf32, #tpu.memory_space<vmem>>, %arg2: memref<32x256xbf16, #tpu.memory_space<vmem>>, %arg3: memref<1x256xf32, #tpu.memory_space<vmem>>, %arg4: memref<256x256xbf16, #tpu.memory_space<vmem>>, %arg5: memref<1x256xf32, #tpu.memory_space<vmem>>, %arg6: memref<256x64xbf16, #tpu.memory_space<vmem>>, %arg7: memref<1x64xf32, #tpu.memory_space<vmem>>, %arg8: memref<64x32xbf16, #tpu.memory_space<vmem>>, %arg9: memref<1x32xf32, #tpu.memory_space<vmem>>, %arg10: memref<32x16xbf16, #tpu.memory_space<vmem>>, %arg11: memref<1x16xf32, #tpu.memory_space<vmem>>, %arg12: memref<1x16xf32, #tpu.memory_space<vmem>>, %arg13: memref<1x1xf32, #tpu.memory_space<vmem>>, %arg14: memref<1xf32, #tpu.memory_space<smem>>, %arg15: memref<1xf32, #tpu.memory_space<smem>>, %arg16: memref<8x1xf32, #tpu.memory_space<vmem>>) attributes {dimension_semantics = [#tpu.dimension_semantics<parallel>], iteration_bounds = array<i64: 1>, scalar_prefetch = 0 : i64, scratch_operands = 0 : i64, tpu.core_type = #tpu.core_type<tc>, window_params = [{transform_indices = @transform_0, window_bounds = array<i64: 8, 32>}, {pipeline_mode = #tpu.pipeline_mode<synchronous>, transform_indices = @transform_1, window_bounds = array<i64: 32, 256>}, {pipeline_mode = #tpu.pipeline_mode<synchronous>, transform_indices = @transform_2, window_bounds = array<i64: 1, 256>}, {pipeline_mode = #tpu.pipeline_mode<synchronous>, transform_indices = @transform_3, window_bounds = array<i64: 256, 256>}, {pipeline_mode = #tpu.pipeline_mode<synchronous>, transform_indices = @transform_4, window_bounds = array<i64: 1, 256>}, {pipeline_mode = #tpu.pipeline_mode<synchronous>, transform_indices = @transform_5, window_bounds = array<i64: 256, 64>}, {pipeline_mode = #tpu.pipeline_mode<synchronous>, transform_indices = @transform_6, window_bounds = array<i64: 1, 64>}, {pipeline_mode = #tpu.pipeline_mode<synchronous>, transform_indices = @transform_7, window_bounds = array<i64: 64, 32>}, {pipeline_mode = #tpu.pipeline_mode<synchronous>, transform_indices = @transform_8, window_bounds = array<i64: 1, 32>}, {pipeline_mode = #tpu.pipeline_mode<synchronous>, transform_indices = @transform_9, window_bounds = array<i64: 32, 16>}, {pipeline_mode = #tpu.pipeline_mode<synchronous>, transform_indices = @transform_10, window_bounds = array<i64: 1, 16>}, {pipeline_mode = #tpu.pipeline_mode<synchronous>, transform_indices = @transform_11, window_bounds = array<i64: 1, 16>}, {pipeline_mode = #tpu.pipeline_mode<synchronous>, transform_indices = @transform_12, window_bounds = array<i64: 1, 1>}, {transform_indices = @transform_13, window_bounds = array<i64: 1>}, {transform_indices = @transform_14, window_bounds = array<i64: 1>}, {transform_indices = @transform_15, window_bounds = array<i64: 8, 1>}]} {
    %c0 = arith.constant 0 : index
    %c0_0 = arith.constant 0 : index
    %0 = vector.load %arg1[%c0, %c0_0] : memref<8x32xf32, #tpu.memory_space<vmem>>, vector<8x32xf32>
    %1 = arith.truncf %0 : vector<8x32xf32> to vector<8x32xbf16>
    %c0_1 = arith.constant 0 : index
    %c0_2 = arith.constant 0 : index
    %2 = vector.load %arg2[%c0_1, %c0_2] : memref<32x256xbf16, #tpu.memory_space<vmem>>, vector<32x256xbf16>
    %cst = arith.constant dense<0.000000e+00> : vector<8x256xf32>
    %3 = tpu.matmul %1, %2, %cst {dimension_numbers = #tpu.dot_dimension_numbers<[1], [0], [0], [1], [0, 0, 1, 1], [], []>} : vector<8x32xbf16>, vector<32x256xbf16>, vector<8x256xf32> -> vector<8x256xf32>
    %c0_3 = arith.constant 0 : index
    %c0_4 = arith.constant 0 : index
    %4 = vector.load %arg3[%c0_3, %c0_4] : memref<1x256xf32, #tpu.memory_space<vmem>>, vector<1x256xf32>
    %5 = vector.broadcast %4 : vector<1x256xf32> to vector<8x256xf32>
    %6 = arith.addf %3, %5 : vector<8x256xf32>
    %cst_5 = arith.constant 0.000000e+00 : f32
    %7 = vector.broadcast %cst_5 : f32 to vector<8x256xf32>
    %8 = arith.cmpf ogt, %6, %7 : vector<8x256xf32>
    %cst_6 = arith.constant 0.00999999977 : f32
    %9 = vector.broadcast %cst_6 : f32 to vector<8x256xf32>
    %10 = arith.mulf %9, %6 : vector<8x256xf32>
    %11 = arith.select %8, %6, %10 : vector<8x256xi1>, vector<8x256xf32>
    %12 = arith.truncf %11 : vector<8x256xf32> to vector<8x256xbf16>
    %c0_7 = arith.constant 0 : index
    %c0_8 = arith.constant 0 : index
    %13 = vector.load %arg4[%c0_7, %c0_8] : memref<256x256xbf16, #tpu.memory_space<vmem>>, vector<256x256xbf16>
    %cst_9 = arith.constant dense<0.000000e+00> : vector<8x256xf32>
    %14 = tpu.matmul %12, %13, %cst_9 {dimension_numbers = #tpu.dot_dimension_numbers<[1], [0], [0], [1], [0, 0, 1, 1], [], []>} : vector<8x256xbf16>, vector<256x256xbf16>, vector<8x256xf32> -> vector<8x256xf32>
    %c0_10 = arith.constant 0 : index
    %c0_11 = arith.constant 0 : index
    %15 = vector.load %arg5[%c0_10, %c0_11] : memref<1x256xf32, #tpu.memory_space<vmem>>, vector<1x256xf32>
    %16 = vector.broadcast %15 : vector<1x256xf32> to vector<8x256xf32>
    %17 = arith.addf %14, %16 : vector<8x256xf32>
    %cst_12 = arith.constant 0.000000e+00 : f32
    %18 = vector.broadcast %cst_12 : f32 to vector<8x256xf32>
    %19 = arith.cmpf ogt, %17, %18 : vector<8x256xf32>
    %cst_13 = arith.constant 0.00999999977 : f32
    %20 = vector.broadcast %cst_13 : f32 to vector<8x256xf32>
    %21 = arith.mulf %20, %17 : vector<8x256xf32>
    %22 = arith.select %19, %17, %21 : vector<8x256xi1>, vector<8x256xf32>
    %23 = arith.truncf %22 : vector<8x256xf32> to vector<8x256xbf16>
    %c0_14 = arith.constant 0 : index
    %c0_15 = arith.constant 0 : index
    %24 = vector.load %arg6[%c0_14, %c0_15] : memref<256x64xbf16, #tpu.memory_space<vmem>>, vector<256x64xbf16>
    %cst_16 = arith.constant dense<0.000000e+00> : vector<8x64xf32>
    %25 = tpu.matmul %23, %24, %cst_16 {dimension_numbers = #tpu.dot_dimension_numbers<[1], [0], [0], [1], [0, 0, 1, 1], [], []>} : vector<8x256xbf16>, vector<256x64xbf16>, vector<8x64xf32> -> vector<8x64xf32>
    %c0_17 = arith.constant 0 : index
    %c0_18 = arith.constant 0 : index
    %26 = vector.load %arg7[%c0_17, %c0_18] : memref<1x64xf32, #tpu.memory_space<vmem>>, vector<1x64xf32>
    %27 = vector.broadcast %26 : vector<1x64xf32> to vector<8x64xf32>
    %28 = arith.addf %25, %27 : vector<8x64xf32>
    %cst_19 = arith.constant 0.000000e+00 : f32
    %29 = vector.broadcast %cst_19 : f32 to vector<8x64xf32>
    %30 = arith.cmpf ogt, %28, %29 : vector<8x64xf32>
    %cst_20 = arith.constant 0.00999999977 : f32
    %31 = vector.broadcast %cst_20 : f32 to vector<8x64xf32>
    %32 = arith.mulf %31, %28 : vector<8x64xf32>
    %33 = arith.select %30, %28, %32 : vector<8x64xi1>, vector<8x64xf32>
    %34 = arith.truncf %33 : vector<8x64xf32> to vector<8x64xbf16>
    %c0_21 = arith.constant 0 : index
    %c0_22 = arith.constant 0 : index
    %35 = vector.load %arg8[%c0_21, %c0_22] : memref<64x32xbf16, #tpu.memory_space<vmem>>, vector<64x32xbf16>
    %cst_23 = arith.constant dense<0.000000e+00> : vector<8x32xf32>
    %36 = tpu.matmul %34, %35, %cst_23 {dimension_numbers = #tpu.dot_dimension_numbers<[1], [0], [0], [1], [0, 0, 1, 1], [], []>} : vector<8x64xbf16>, vector<64x32xbf16>, vector<8x32xf32> -> vector<8x32xf32>
    %c0_24 = arith.constant 0 : index
    %c0_25 = arith.constant 0 : index
    %37 = vector.load %arg9[%c0_24, %c0_25] : memref<1x32xf32, #tpu.memory_space<vmem>>, vector<1x32xf32>
    %38 = vector.broadcast %37 : vector<1x32xf32> to vector<8x32xf32>
    %39 = arith.addf %36, %38 : vector<8x32xf32>
    %cst_26 = arith.constant 0.000000e+00 : f32
    %40 = vector.broadcast %cst_26 : f32 to vector<8x32xf32>
    %41 = arith.cmpf ogt, %39, %40 : vector<8x32xf32>
    %cst_27 = arith.constant 0.00999999977 : f32
    %42 = vector.broadcast %cst_27 : f32 to vector<8x32xf32>
    %43 = arith.mulf %42, %39 : vector<8x32xf32>
    %44 = arith.select %41, %39, %43 : vector<8x32xi1>, vector<8x32xf32>
    %45 = arith.truncf %44 : vector<8x32xf32> to vector<8x32xbf16>
    %c0_28 = arith.constant 0 : index
    %c0_29 = arith.constant 0 : index
    %46 = vector.load %arg10[%c0_28, %c0_29] : memref<32x16xbf16, #tpu.memory_space<vmem>>, vector<32x16xbf16>
    %cst_30 = arith.constant dense<0.000000e+00> : vector<8x16xf32>
    %47 = tpu.matmul %45, %46, %cst_30 {dimension_numbers = #tpu.dot_dimension_numbers<[1], [0], [0], [1], [0, 0, 1, 1], [], []>} : vector<8x32xbf16>, vector<32x16xbf16>, vector<8x16xf32> -> vector<8x16xf32>
    %c0_31 = arith.constant 0 : index
    %c0_32 = arith.constant 0 : index
    %48 = vector.load %arg11[%c0_31, %c0_32] : memref<1x16xf32, #tpu.memory_space<vmem>>, vector<1x16xf32>
    %49 = vector.broadcast %48 : vector<1x16xf32> to vector<8x16xf32>
    %50 = arith.addf %47, %49 : vector<8x16xf32>
    %cst_33 = arith.constant 0.000000e+00 : f32
    %51 = vector.broadcast %cst_33 : f32 to vector<8x16xf32>
    %52 = arith.cmpf ogt, %50, %51 : vector<8x16xf32>
    %cst_34 = arith.constant 0.00999999977 : f32
    %53 = vector.broadcast %cst_34 : f32 to vector<8x16xf32>
    %54 = arith.mulf %53, %50 : vector<8x16xf32>
    %55 = arith.select %52, %50, %54 : vector<8x16xi1>, vector<8x16xf32>
    %c0_35 = arith.constant 0 : index
    %c0_36 = arith.constant 0 : index
    %56 = vector.load %arg12[%c0_35, %c0_36] : memref<1x16xf32, #tpu.memory_space<vmem>>, vector<1x16xf32>
    %57 = vector.broadcast %56 : vector<1x16xf32> to vector<8x16xf32>
    %58 = arith.mulf %55, %57 : vector<8x16xf32>
    %cst_37 = arith.constant dense<0.000000e+00> : vector<8xf32>
    %59 = vector.multi_reduction <add>, %58, %cst_37 [1] : vector<8x16xf32> to vector<8xf32>
    %60 = vector.shape_cast %59 : vector<8xf32> to vector<8x1xf32>
    %c0_38 = arith.constant 0 : index
    %c0_39 = arith.constant 0 : index
    %61 = vector.load %arg13[%c0_38, %c0_39] : memref<1x1xf32, #tpu.memory_space<vmem>>, vector<1x1xf32>
    %62 = vector.broadcast %61 : vector<1x1xf32> to vector<8x1xf32>
    %63 = arith.addf %60, %62 : vector<8x1xf32>
    %c0_40 = arith.constant 0 : index
    %64 = memref.load %arg14[%c0_40] : memref<1xf32, #tpu.memory_space<smem>>
    %c0_41 = arith.constant 0 : index
    %65 = memref.load %arg15[%c0_41] : memref<1xf32, #tpu.memory_space<smem>>
    %66 = vector.broadcast %65 : f32 to vector<8x1xf32>
    %67 = arith.mulf %66, %63 : vector<8x1xf32>
    %68 = vector.broadcast %64 : f32 to vector<8x1xf32>
    %69 = arith.subf %67, %68 : vector<8x1xf32>
    %70 = arith.negf %69 : vector<8x1xf32>
    %71 = math.exp %70 : vector<8x1xf32>
    %cst_42 = arith.constant 1.000000e+00 : f32
    %72 = vector.broadcast %cst_42 : f32 to vector<8x1xf32>
    %73 = arith.addf %72, %71 : vector<8x1xf32>
    %74 = arith.divf %72, %73 : vector<8x1xf32>
    %c0_43 = arith.constant 0 : index
    %c0_44 = arith.constant 0 : index
    %75 = vector.load %arg16[%c0_43, %c0_44] : memref<8x1xf32, #tpu.memory_space<vmem>>, vector<8x1xf32>
    tpu.vector_store %arg16[%c0_43, %c0_44], %74 {strides = array<i32>} : memref<8x1xf32, #tpu.memory_space<vmem>>, vector<8x1xf32>,
    return
  }
  func.func @transform_0(%arg0: i32) -> (i32, i32) {
    %c0_i32 = arith.constant 0 : i32
    %c0_i32_0 = arith.constant 0 : i32
    return %arg0, %c0_i32 : i32, i32
  }
  func.func @transform_1(%arg0: i32) -> (i32, i32) {
    %c0_i32 = arith.constant 0 : i32
    %c0_i32_0 = arith.constant 0 : i32
    %c0_i32_1 = arith.constant 0 : i32
    return %c0_i32, %c0_i32_0 : i32, i32
  }
  func.func @transform_2(%arg0: i32) -> (i32, i32) {
    %c0_i32 = arith.constant 0 : i32
    %c0_i32_0 = arith.constant 0 : i32
    %c0_i32_1 = arith.constant 0 : i32
    return %c0_i32, %c0_i32_0 : i32, i32
  }
  func.func @transform_3(%arg0: i32) -> (i32, i32) {
    %c0_i32 = arith.constant 0 : i32
    %c0_i32_0 = arith.constant 0 : i32
    %c0_i32_1 = arith.constant 0 : i32
    return %c0_i32, %c0_i32_0 : i32, i32
  }
  func.func @transform_4(%arg0: i32) -> (i32, i32) {
    %c0_i32 = arith.constant 0 : i32
    %c0_i32_0 = arith.constant 0 : i32
    %c0_i32_1 = arith.constant 0 : i32
    return %c0_i32, %c0_i32_0 : i32, i32
  }
  func.func @transform_5(%arg0: i32) -> (i32, i32) {
    %c0_i32 = arith.constant 0 : i32
    %c0_i32_0 = arith.constant 0 : i32
    %c0_i32_1 = arith.constant 0 : i32
    return %c0_i32, %c0_i32_0 : i32, i32
  }
  func.func @transform_6(%arg0: i32) -> (i32, i32) {
    %c0_i32 = arith.constant 0 : i32
    %c0_i32_0 = arith.constant 0 : i32
    %c0_i32_1 = arith.constant 0 : i32
    return %c0_i32, %c0_i32_0 : i32, i32
  }
  func.func @transform_7(%arg0: i32) -> (i32, i32) {
    %c0_i32 = arith.constant 0 : i32
    %c0_i32_0 = arith.constant 0 : i32
    %c0_i32_1 = arith.constant 0 : i32
    return %c0_i32, %c0_i32_0 : i32, i32
  }
  func.func @transform_8(%arg0: i32) -> (i32, i32) {
    %c0_i32 = arith.constant 0 : i32
    %c0_i32_0 = arith.constant 0 : i32
    %c0_i32_1 = arith.constant 0 : i32
    return %c0_i32, %c0_i32_0 : i32, i32
  }
  func.func @transform_9(%arg0: i32) -> (i32, i32) {
    %c0_i32 = arith.constant 0 : i32
    %c0_i32_0 = arith.constant 0 : i32
    %c0_i32_1 = arith.constant 0 : i32
    return %c0_i32, %c0_i32_0 : i32, i32
  }
  func.func @transform_10(%arg0: i32) -> (i32, i32) {
    %c0_i32 = arith.constant 0 : i32
    %c0_i32_0 = arith.constant 0 : i32
    %c0_i32_1 = arith.constant 0 : i32
    return %c0_i32, %c0_i32_0 : i32, i32
  }
  func.func @transform_11(%arg0: i32) -> (i32, i32) {
    %c0_i32 = arith.constant 0 : i32
    %c0_i32_0 = arith.constant 0 : i32
    %c0_i32_1 = arith.constant 0 : i32
    return %c0_i32, %c0_i32_0 : i32, i32
  }
  func.func @transform_12(%arg0: i32) -> (i32, i32) {
    %c0_i32 = arith.constant 0 : i32
    %c0_i32_0 = arith.constant 0 : i32
    %c0_i32_1 = arith.constant 0 : i32
    return %c0_i32, %c0_i32_0 : i32, i32
  }
  func.func @transform_13(%arg0: i32) -> i32 {
    %c0_i32 = arith.constant 0 : i32
    %c0_i32_0 = arith.constant 0 : i32
    return %c0_i32 : i32
  }
  func.func @transform_14(%arg0: i32) -> i32 {
    %c0_i32 = arith.constant 0 : i32
    %c0_i32_0 = arith.constant 0 : i32
    return %c0_i32 : i32
  }
  func.func @transform_15(%arg0: i32) -> (i32, i32) {
    %c0_i32 = arith.constant 0 : i32
    %c0_i32_0 = arith.constant 0 : i32
    return %arg0, %c0_i32 : i32, i32
  }
}

</mosaic_0001>

<bundles_post_ra>
// kernel: tpu_custom_call.1
= control target key start
LH: loop header
LB: loop body
LE: loop exit
PB: predicated region body
PF: predicated region fallthrough
CT: control target
= control target key end

     0   :  { %s1357_s0 = inlined_call_operand.vmem [shape: f32[8,32], index: 0, kind: input, shape index: {}]   ;;  %s1358_s1 = inlined_call_operand.hbm [shape: bf16[32,256], index: 1, kind: input, shape index: {}]   ;;  %s1359_s2 = inlined_call_operand.vmem [shape: f32[1,256], index: 2, kind: input, shape index: {}]   ;;  %s1360_s3 = inlined_call_operand.vmem [shape: bf16[256,256], index: 3, kind: input, shape index: {}]   ;;  %s1361_s4 = inlined_call_operand.hbm [shape: f32[1,256], index: 4, kind: input, shape index: {}]   ;;  %s1362_s5 = inlined_call_operand.vmem [shape: bf16[256,64], index: 5, kind: input, shape index: {}]   ;;  %s1363_s6 = inlined_call_operand.vmem [shape: f32[1,64], index: 6, kind: input, shape index: {}]   ;;  %s1364_s7 = inlined_call_operand.vmem [shape: bf16[64,32], index: 7, kind: input, shape index: {}]   ;;  %s1365_s8 = inlined_call_operand.vmem [shape: f32[1,32], index: 8, kind: input, shape index: {}]   ;;  %s1366_s9 = inlined_call_operand.vmem [shape: bf16[32,16], index: 9, kind: input, shape index: {}]   ;;  %s1367_s10 = inlined_call_operand.vmem [shape: f32[1,16], index: 10, kind: input, shape index: {}]   ;;  %s1368_s11 = inlined_call_operand.vmem [shape: f32[1,16], index: 11, kind: input, shape index: {}]   ;;  %s1369_s12 = inlined_call_operand.<no memory space> [shape: f32[1,1], index: 12, kind: input, shape index: {}]   ;;  %s1370_s13 = inlined_call_operand.<no memory space> [shape: f32[1], index: 13, kind: input, shape index: {}]   ;;  %s1371_s14 = inlined_call_operand.<no memory space> [shape: f32[1], index: 14, kind: input, shape index: {}]   ;;  %s1372_s15 = inlined_call_operand.vmem [shape: f32[8,1], index: 15, kind: output, shape index: {}]  }
   0x1   :  { %v20_v0 = vstv %s1369_s12 }
   0x2   :  { %21 = vst [vmem:[#allocation2] sm:$0x1] %v20_v0 }
   0x3   :  { %24 = vsyncpa [#allocation6], 0 }
   0x4   :  { %25 = vsyncpa [#allocation8], 0  ;;  %s1052_s20 = smov [#allocation5]   ;;  %s1004_s24 = scalar_lea.hbm %s1358_s1, 512 }
   0x5   :  { %s33_s21 = sshll.u32 %s1052_s20, 4  ;;  %p1005_p0 = scmp.ne.s32.totalorder %s1358_s1, %s1004_s24  ;;  %s34_s21 = int_to_ptr.vmem [resolvable:$true] %s33_s21 }
   0x6   :  { %p1008_p1 = scmp.lt.u32.totalorder %s1004_s24, %s1358_s1 }
   0x8   :  { %p1010_p2 = pnand %p1008_p1, %p1005_p0 }
   0xa   :  { %1013 = shalt.err (!%p1010_p2)
}
   0xb   :  { %s1014_s12 = scalar_lea.vmem %s34_s21, 512  ;;  %p1019_p4 = scmp.lt.s32.totalorder %s34_s21, %s34_s21 }
   0xc   :  { %p1015_p3 = scmp.ne.s32.totalorder %s34_s21, %s1014_s12  ;;  %p1020_p5 = scmp.lt.s32.totalorder %s1014_s12, %s1014_s12 }
   0xe   :  { %p1021_p6 = por %p1020_p5, %p1019_p4 }
  0x10   :  { %p1022_p7 = pnand %p1021_p6, %p1015_p3 }
  0x12   :  { %1025 = shalt.err (!%p1022_p7)
}
  0x13   :  { %s1053_s29 = smov 128   ;;  %s1054_s30 = smov 8  }
  0x14   :  { %39 = dma.hbm_to_vmem [thread:$0]  %s1358_s1, 512, %s34_s21, [#allocation6], %s1053_s29, %s1053_s29, %s1054_s30  }
  0x15   :  { %s1055_s18 = smov [#allocation7]   ;;  %s1026_s23 = scalar_lea.hbm %s1361_s4, 32 }
  0x16   :  { %s50_s19 = sshll.u32 %s1055_s18, 4  ;;  %p1027_p8 = scmp.ne.s32.totalorder %s1361_s4, %s1026_s23  ;;  %s51_s19 = int_to_ptr.vmem [resolvable:$true] %s50_s19 }
  0x17   :  { %p1030_p9 = scmp.lt.u32.totalorder %s1026_s23, %s1361_s4 }
  0x19   :  { %p1032_p10 = pnand %p1030_p9, %p1027_p8 }
  0x1b   :  { %1035 = shalt.err (!%p1032_p10)
}
  0x1c   :  { %s1036_s28 = scalar_lea.vmem %s51_s19, 32  ;;  %p1041_p12 = scmp.lt.s32.totalorder %s51_s19, %s51_s19 }
  0x1d   :  { %p1037_p11 = scmp.ne.s32.totalorder %s51_s19, %s1036_s28  ;;  %p1042_p13 = scmp.lt.s32.totalorder %s1036_s28, %s1036_s28 }
  0x1f   :  { %p1043_p0 = por %p1042_p13, %p1041_p12 }
  0x21   :  { %p1044_p1 = pnand %p1043_p0, %p1037_p11 }
  0x23   :  { %1047 = shalt.err (!%p1044_p1)
}
  0x24   :  { %53 = dma.hbm_to_vmem [thread:$0]  %s1361_s4, 32, %s51_s19, [#allocation8]  }
  0x25   :  { %1048 = dma.done.wait [#allocation6], 512  }
  0x26   :  { %1049 = vsyncadd [#allocation6], 4294966784 }
  0x27   :  { %1050 = dma.done.wait [#allocation8], 32  }
  0x28   :  { %1051 = vsyncadd [#allocation8], 4294967264  ;;  %v1056_v1 = vmov 0   ;;  %v924_v2 = vld [vmem:[#allocation5 + $0x4] ss:$8 sps:$4 sm:$0xff]   ;;  %vm119_vm0 = vcmask 261120   ;;  %v89_v52 = vlaneseq }
  0x29   :  { %155 = vmatprep.mubr.bf16.mxu0 %v1056_v1  ;;  %v926_v3 = vld [vmem:[#allocation5] ss:$8 sps:$4 sm:$0xff]   ;;  %123 = vmatprep.subr.bf16.mxu0 %v924_v2  ;;  %v927_v4 = vld [vmem:[#allocation5 + $0x14] ss:$8 sps:$4 sm:$0xff]   ;;  %v929_v5 = vld [vmem:[#allocation5 + $0x10] ss:$8 sps:$4 sm:$0xff]  }
  0x2a   :  { %v81_v6 = vld [vmem:[%s1357_s0] sm:$0xff]  ;;  %124 = vmatpush1.bf16.msra.mxu0 %v926_v3  ;;  %v933_v9 = vld [vmem:[%s1360_s3 + $0x14] ss:$8 sps:$4 sm:$0xff]   ;;  %v935_v11 = vld [vmem:[%s1360_s3 + $0x10] ss:$8 sps:$4 sm:$0xff]   ;;  %v90_v53 = vshrl.u32 %v89_v52, 7 }
  0x2b   :  { %v930_v7 = vld [vmem:[%s1360_s3 + $0x4] ss:$8 sps:$4 sm:$0xff]   ;;  %125 = vmatprep.subr.bf16.mxu0 %v927_v4  ;;  %v932_v8 = vld [vmem:[%s1360_s3] ss:$8 sps:$4 sm:$0xff]   ;;  %v82_v10 = vpack.c.bf16 %v81_v6, %v81_v6  ;;  %v939_v14 = vld [vmem:[%s1360_s3 + $0x34] ss:$8 sps:$4 sm:$0xff]  }
  0x2c   :  { %376 = vmatprep.subr.bf16.mxu1 %v930_v7  ;;  %v936_v12 = vld [vmem:[%s1360_s3 + $0x24] ss:$8 sps:$4 sm:$0xff]   ;;  %v938_v13 = vld [vmem:[%s1360_s3 + $0x20] ss:$8 sps:$4 sm:$0xff]   ;;  %v941_v15 = vld [vmem:[%s1360_s3 + $0x30] ss:$8 sps:$4 sm:$0xff]  }
  0x2d   :  { %377 = vmatpush1.bf16.msra.mxu1 %v932_v8  ;;  %v942_v16 = vld [vmem:[%s1360_s3 + $0x44] ss:$8 sps:$4 sm:$0xff]   ;;  %v944_v17 = vld [vmem:[%s1360_s3 + $0x40] ss:$8 sps:$4 sm:$0xff]   ;;  %v945_v18 = vld [vmem:[%s1360_s3 + $0x54] ss:$8 sps:$4 sm:$0xff]  }
  0x2e   :  { %126 = vmatpush1.bf16.msra.mxu0 %v929_v5  ;;  %378 = vmatprep.subr.bf16.mxu1 %v933_v9  ;;  %v947_v19 = vld [vmem:[%s1360_s3 + $0x50] ss:$8 sps:$4 sm:$0xff]   ;;  %v948_v20 = vld [vmem:[%s1360_s3 + $0x64] ss:$8 sps:$4 sm:$0xff]   ;;  %v950_v21 = vld [vmem:[%s1360_s3 + $0x60] ss:$8 sps:$4 sm:$0xff]  }
  0x2f   :  { %v951_v22 = vld [vmem:[%s1360_s3 + $0x74] ss:$8 sps:$4 sm:$0xff]   ;;  %v953_v23 = vld [vmem:[%s1360_s3 + $0x70] ss:$8 sps:$4 sm:$0xff]   ;;  %v954_v24 = vld [vmem:[%s1360_s3 + $0x84] ss:$8 sps:$4 sm:$0xff]  }
  0x30   :  { %v956_v25 = vld [vmem:[%s1360_s3 + $0x80] ss:$8 sps:$4 sm:$0xff]   ;;  %v957_v26 = vld [vmem:[%s1360_s3 + $0x94] ss:$8 sps:$4 sm:$0xff]   ;;  %v959_v27 = vld [vmem:[%s1360_s3 + $0x90] ss:$8 sps:$4 sm:$0xff]  }
  0x31   :  { %804 = vmatmul.mubr.msk.bf16.vlgmr.msra.gmra.mrb[0].mxu0 %vm119_vm0, %v82_v10  ;;  %379 = vmatpush1.bf16.msra.mxu1 %v935_v11  ;;  %v960_v28 = vld [vmem:[%s1360_s3 + $0xa4] ss:$8 sps:$4 sm:$0xff]   ;;  %v962_v29 = vld [vmem:[%s1360_s3 + $0xa0] ss:$8 sps:$4 sm:$0xff]   ;;  %v963_v30 = vld [vmem:[%s1360_s3 + $0xb4] ss:$8 sps:$4 sm:$0xff]  }
  0x32   :  { %380 = vmatprep.subr.bf16.mxu1 %v936_v12  ;;  %v965_v31 = vld [vmem:[%s1360_s3 + $0xb0] ss:$8 sps:$4 sm:$0xff]   ;;  %v966_v32 = vld [vmem:[%s1360_s3 + $0xc4] ss:$8 sps:$4 sm:$0xff]   ;;  %v968_v33 = vld [vmem:[%s1360_s3 + $0xc0] ss:$8 sps:$4 sm:$0xff]  }
  0x33   :  { %v969_v34 = vld [vmem:[%s1360_s3 + $0xd4] ss:$8 sps:$4 sm:$0xff]   ;;  %v971_v35 = vld [vmem:[%s1360_s3 + $0xd0] ss:$8 sps:$4 sm:$0xff]   ;;  %v972_v36 = vld [vmem:[%s1360_s3 + $0xe4] ss:$8 sps:$4 sm:$0xff]  }
  0x34   :  { %v974_v37 = vld [vmem:[%s1360_s3 + $0xe0] ss:$8 sps:$4 sm:$0xff]   ;;  %v975_v38 = vld [vmem:[%s1360_s3 + $0xf4] ss:$8 sps:$4 sm:$0xff]   ;;  %v977_v39 = vld [vmem:[%s1360_s3 + $0xf0] ss:$8 sps:$4 sm:$0xff]  }
  0x35   :  { %381 = vmatpush1.bf16.msra.mxu1 %v938_v13  ;;  %v978_v40 = vld [vmem:[%s1362_s5 + $0x40] sm:$0xff]   ;;  %v980_v42 = vld [vmem:[%s1362_s5 + $0x48] sm:$0xff]   ;;  %v982_v44 = vld [vmem:[%s1362_s5 + $0x50] sm:$0xff]   ;;  %v91_v54 = vsub.s32 0, %v90_v53  ;;  %v95_v56 = vsub.s32 1, %v90_v53  ;;  %v1057_v11 = vmov 0.0  }
  0x36   :  { %382 = vmatprep.subr.bf16.mxu1 %v939_v14  ;;  %v979_v41 = vld [vmem:[%s1362_s5] sm:$0xff]   ;;  %867 = vmatprep.subr.bf16.mxu0 %v978_v40  ;;  %v981_v43 = vld [vmem:[%s1362_s5 + $0x8] sm:$0xff]   ;;  %v983_v45 = vld [vmem:[%s1362_s5 + $0x10] sm:$0xff]   ;;  %vm1058_vm5 = vmmov 0   ;;  %vm643_vm7 = vcmask 523264   ;;  %vm768_vm10 = vcmask 130048  }
  0x37   :  { %868 = vmatpush3.bf16.msra.mxu0 %v979_v41  ;;  %v984_v46 = vld [vmem:[%s1362_s5 + $0x58] sm:$0xff]   ;;  %v986_v48 = vld [vmem:[%s1362_s5 + $0x60] sm:$0xff]   ;;  %v988_v50 = vld [vmem:[%s1362_s5 + $0x68] sm:$0xff]   ;;  %vm792_vm11 = vcmask 7168  }
  0x38   :  { %869 = vmatprep.subr.bf16.mxu0 %v980_v42  ;;  %v985_v47 = vld [vmem:[%s1362_s5 + $0x18] sm:$0xff]   ;;  %v987_v49 = vld [vmem:[%s1362_s5 + $0x20] sm:$0xff]   ;;  %v989_v51 = vld [vmem:[%s1362_s5 + $0x28] sm:$0xff]  }
  0x39   :  { %383 = vmatpush1.bf16.msra.mxu1 %v941_v15  ;;  %v87_v55 = vld [vmem:[%s1359_s2] sm:$0x3]  ;;  %v990_v7 = vld [vmem:[%s1362_s5 + $0x70] sm:$0xff]   ;;  %v992_v9 = vld [vmem:[%s1362_s5 + $0x78] sm:$0xff]  }
  0x3a   :  { %384 = vmatprep.subr.bf16.mxu1 %v942_v16  ;;  %v92_v57 = vrot.slane %v87_v55, %v91_v54  ;;  %v96_v58 = vrot.slane %v87_v55, %v95_v56  ;;  %v991_v8 = vld [vmem:[%s1362_s5 + $0x30] sm:$0xff]   ;;  %v993_v10 = vld [vmem:[%s1362_s5 + $0x38] sm:$0xff]   ;;  %v204_v12 = vld [vmem:[#allocation7] sm:$0x3] }
  0x3b   :  { %870 = vmatpush3.bf16.msra.mxu0 %v981_v43  ;;  %v209_v13 = vrot.slane %v204_v12, %v91_v54  ;;  %v213_v14 = vrot.slane %v204_v12, %v95_v56  ;;  %v998_v41 = vld [vmem:[%s1366_s9] sm:$0xff]   ;;  %v999_v42 = vld [vmem:[%s1366_s9 + $0x8] sm:$0xff]  }
  0x3c   :  { %871 = vmatprep.subr.bf16.mxu0 %v982_v44  ;;  %v854_v43 = vld [vmem:[%s1365_s8] ss:$0 sm:$0xff] }
  0x3d   :  { %385 = vmatpush1.bf16.msra.mxu1 %v944_v17  ;;  %v860_v52 = vld [vmem:[%s1367_s10] ss:$0 sm:$0xff] }
  0x3e   :  { %386 = vmatprep.subr.bf16.mxu1 %v945_v18 }
  0x3f   :  { %872 = vmatpush3.bf16.msra.mxu0 %v983_v45 }
  0x40   :  { %873 = vmatprep.subr.bf16.mxu0 %v984_v46 }
  0x41   :  { %387 = vmatpush1.bf16.msra.mxu1 %v947_v19 }
  0x42   :  { %388 = vmatprep.subr.bf16.mxu1 %v948_v20 }
  0x43   :  { %874 = vmatpush3.bf16.msra.mxu0 %v985_v47 }
  0x44   :  { %875 = vmatprep.subr.bf16.mxu0 %v986_v48 }
  0x45   :  { %389 = vmatpush1.bf16.msra.mxu1 %v950_v21 }
  0x46   :  { %390 = vmatprep.subr.bf16.mxu1 %v951_v22 }
  0x47   :  { %876 = vmatpush3.bf16.msra.mxu0 %v987_v49 }
  0x48   :  { %877 = vmatprep.subr.bf16.mxu0 %v988_v50 }
  0x49   :  { %391 = vmatpush1.bf16.msra.mxu1 %v953_v23 }
  0x4a   :  { %392 = vmatprep.subr.bf16.mxu1 %v954_v24 }
  0x4b   :  { %878 = vmatpush3.bf16.msra.mxu0 %v989_v51 }
  0x4c   :  { %879 = vmatprep.subr.bf16.mxu0 %v990_v7 }
  0x4d   :  { %393 = vmatpush1.bf16.msra.mxu1 %v956_v25 }
  0x4e   :  { %394 = vmatprep.subr.bf16.mxu1 %v957_v26  ;;  %v994_v26 = vld [vmem:[%s1364_s7] sm:$0xff]  }
  0x4f   :  { %880 = vmatpush3.bf16.msra.mxu0 %v991_v8 }
  0x50   :  { %881 = vmatprep.subr.bf16.mxu0 %v992_v9 }
  0x51   :  { %395 = vmatpush1.bf16.msra.mxu1 %v959_v27 }
  0x52   :  { %396 = vmatprep.subr.bf16.mxu1 %v960_v28  ;;  %v995_v28 = vld [vmem:[%s1364_s7 + $0x8] sm:$0xff]  }
  0x53   :  { %882 = vmatpush3.bf16.msra.mxu0 %v993_v10 }
  0x54   :  { %897 = vmatprep.subr.bf16.mxu0 %v1057_v11 }
  0x55   :  { %397 = vmatpush1.bf16.msra.mxu1 %v962_v29  ;;  %v996_v29 = vld [vmem:[%s1364_s7 + $0x10] sm:$0xff]  }
  0x56   :  { %398 = vmatprep.subr.bf16.mxu1 %v963_v30  ;;  %v997_v30 = vld [vmem:[%s1364_s7 + $0x18] sm:$0xff]  }
  0x59   :  { %399 = vmatpush1.bf16.msra.mxu1 %v965_v31 }
  0x5a   :  { %400 = vmatprep.subr.bf16.mxu1 %v966_v32  ;;  %v837_v32 = vld [vmem:[%s1363_s6] ss:$0 sm:$0xff] }
  0x5d   :  { %401 = vmatpush1.bf16.msra.mxu1 %v968_v33 }
  0x5e   :  { %402 = vmatprep.subr.bf16.mxu1 %v969_v34 }
  0x61   :  { %403 = vmatpush1.bf16.msra.mxu1 %v971_v35 }
  0x62   :  { %404 = vmatprep.subr.bf16.mxu1 %v972_v36 }
  0x65   :  { %405 = vmatpush1.bf16.msra.mxu1 %v974_v37 }
  0x66   :  { %406 = vmatprep.subr.bf16.mxu1 %v975_v38 }
  0x69   :  { %407 = vmatpush1.bf16.msra.mxu1 %v977_v39 }
 0x104   :  { %v157_v59 = vpop.f32.mrb[0].mxu0 }
 0x105   :  { %v158_v60 = vadd.f32 %v157_v59, %v92_v57  ;;  %v159_v61 = vpop.f32.mrb[1].mxu0  ;;  %v864_v59 = vld [vmem:[%s1368_s11] ss:$0 sm:$0xff] }
 0x106   :  { %v160_v62 = vadd.f32 %v159_v61, %v96_v58  ;;  %v161_v63 = vpop.f32.mrb[2].mxu0 }
 0x107   :  { %vm164_vm1 = vcmp.gt.f32.partialorder %v158_v60, 0.0  ;;  %v166_v0 = vmul.f32 0.01, %v158_v60  ;;  %v162_v1 = vpop.f32.mrb[3].mxu0  ;;  %v865_v63 = vld [vmem:[#allocation2] ss:$0 sm:$0xff] }
 0x108   :  { %vm165_vm2 = vcmp.gt.f32.partialorder %v160_v62, 0.0  ;;  %v167_v2 = vmul.f32 0.01, %v160_v62  ;;  %v782_v1 = vstv %s1371_s14 }
 0x109   :  { %v168_v3 = vsel %vm164_vm1, %v158_v60, %v166_v0 }
 0x10a   :  { %v169_v4 = vsel %vm165_vm2, %v160_v62, %v167_v2  ;;  %v170_v6 = vpack.c.bf16 %v168_v3, %v168_v3  ;;  %v784_v3 = vstv %s1370_s13 }
 0x10b   :  { %v171_v5 = vpack.c.bf16 %v169_v4, %v169_v4 }
 0x10d   :  { %408 = vmatprep.mubr.bf16.mxu1 %v171_v5 }
 0x10e   :  { %409 = vmatmul.mubr.bf16.vlgmr.msra.gmra.mrb[0].mxu1 %v170_v6 }
 0x1e1   :  { %v410_v15 = vpop.f32.mrb[0].mxu1 }
 0x1e2   :  { %v411_v16 = vadd.f32 %v410_v15, %v209_v13  ;;  %v412_v17 = vpop.f32.mrb[1].mxu1 }
 0x1e3   :  { %v413_v18 = vadd.f32 %v412_v17, %v213_v14  ;;  %v414_v19 = vpop.f32.mrb[2].mxu1 }
 0x1e4   :  { %vm417_vm3 = vcmp.gt.f32.partialorder %v411_v16, 0.0  ;;  %v419_v20 = vmul.f32 0.01, %v411_v16  ;;  %v415_v21 = vpop.f32.mrb[3].mxu1 }
 0x1e5   :  { %vm418_vm4 = vcmp.gt.f32.partialorder %v413_v18, 0.0  ;;  %v420_v22 = vmul.f32 0.01, %v413_v18 }
 0x1e6   :  { %v421_v23 = vsel %vm417_vm3, %v411_v16, %v419_v20 }
 0x1e7   :  { %v422_v24 = vsel %vm418_vm4, %v413_v18, %v420_v22  ;;  %v423_v27 = vpack.c.bf16 %v421_v23, %v421_v23 }
 0x1e8   :  { %v424_v25 = vpack.c.bf16 %v422_v24, %v422_v24 }
 0x1ea   :  { %592 = vmatprep.mubr.bf16.mxu0 %v424_v25 }
 0x1eb   :  { %593 = vmatmul.mubr.bf16.vlgmr.msra.gmra.mrb[4].mxu0 %v423_v27 }
 0x1ec   :  { %898 = vmatpush3.bf16.msra.mxu0 %v994_v26  ;;  %905 = vmatprep.mubr.msk.bf16.mxu0 %vm1058_vm5, %v1057_v11 }
 0x1ed   :  { %899 = vmatprep.subr.bf16.mxu0 %v1057_v11 }
 0x1f0   :  { %900 = vmatpush3.bf16.msra.mxu0 %v995_v28 }
 0x1f1   :  { %901 = vmatprep.subr.bf16.mxu0 %v1057_v11 }
 0x1f4   :  { %902 = vmatpush3.bf16.msra.mxu0 %v996_v29 }
 0x1f5   :  { %903 = vmatprep.subr.bf16.mxu0 %v1057_v11 }
 0x1f8   :  { %904 = vmatpush3.bf16.msra.mxu0 %v997_v30 }
 0x1f9   :  { %909 = vmatprep.subr.bf16.mxu0 %v1057_v11 }
 0x2be   :  { %v883_v31 = vpop.f32.mrb[4].mxu0 }
 0x2bf   :  { %v884_v33 = vpop.f32.mrb[5].mxu0 }
 0x2c0   :  { %v885_v34 = vadd.f32 %v884_v33, %v883_v31  ;;  %v886_v35 = vpop.f32.mrb[6].mxu0 }
 0x2c1   :  { %v887_v36 = vpop.f32.mrb[7].mxu0 }
 0x2c2   :  { %v595_v37 = vadd.f32 %v885_v34, %v837_v32 }
 0x2c4   :  { %vm600_vm6 = vcmp.gt.f32.partialorder %v595_v37, 0.0  ;;  %v601_v38 = vmul.f32 0.01, %v595_v37 }
 0x2c6   :  { %v602_v39 = vsel %vm600_vm6, %v595_v37, %v601_v38 }
 0x2c7   :  { %v603_v40 = vpack.c.bf16 %v602_v39, %v602_v39 }
 0x2c9   :  { %906 = vmatmul.mubr.msk.bf16.vlgmr.msra.gmra.mrb[8].mxu0 %vm643_vm7, %v603_v40 }
 0x2ca   :  { %913 = vmatprep.mubr.msk.bf16.mxu0 %vm1058_vm5, %v1057_v11  ;;  %910 = vmatpush3.bf16.msra.mxu0 %v998_v41 }
 0x2cb   :  { %911 = vmatprep.subr.bf16.mxu0 %v1057_v11 }
 0x2ce   :  { %912 = vmatpush3.bf16.msra.mxu0 %v999_v42 }
 0x39c   :  { %v681_v44 = vpop.f32.mrb[8].mxu0 }
 0x39d   :  { %v682_v45 = vadd.f32 %v854_v43, %v681_v44  ;;  %v907_v46 = vpop.f32.mrb[9].mxu0 }
 0x39e   :  { %v684_v47 = vpop.f32.mrb[10].mxu0 }
 0x39f   :  { %vm687_vm8 = vcmp.gt.f32.partialorder %v682_v45, 0.0  ;;  %v688_v48 = vmul.f32 0.01, %v682_v45  ;;  %v908_v49 = vpop.f32.mrb[11].mxu0 }
 0x3a1   :  { %v689_v50 = vsel %vm687_vm8, %v682_v45, %v688_v48 }
 0x3a2   :  { %v690_v51 = vpack.c.bf16 %v689_v50, %v689_v50 }
 0x3a4   :  { %914 = vmatmul.mubr.msk.bf16.vlgmr.msra.gmra.mrb[12].mxu0 %vm119_vm0, %v690_v51 }
 0x477   :  { %v751_v53 = vpop.f32.mrb[12].mxu0 }
 0x478   :  { %v752_v54 = vadd.f32 %v860_v52, %v751_v53  ;;  %v915_v55 = vpop.f32.mrb[13].mxu0 }
 0x479   :  { %v754_v56 = vpop.f32.mrb[14].mxu0 }
 0x47a   :  { %v758_v57 = vmul.f32 0.01, %v752_v54  ;;  %v916_v58 = vpop.f32.mrb[15].mxu0  ;;  %vm757_vm9 = vcmp.gt.f32.partialorder %v752_v54, 0.0 }
 0x47c   :  { %v759_v60 = vsel %vm757_vm9, %v752_v54, %v758_v57 }
 0x47d   :  { %v767_v61 = vmul.f32 %v864_v59, %v759_v60 }
 0x47f   :  { %v769_v62 = vsel %vm768_vm10, %v767_v61, 0.0 }
 0x480   :  { %770 = vadd.xlane.f32.xlu0 %v769_v62 }
 0x50d   :  { %v771_v0 = vpop.xlane.xlu0 %770 }
 0x50e   :  { %v779_v2 = vadd.f32 %v865_v63, %v771_v0 }
 0x510   :  { %v783_v4 = vmul.f32 %v782_v1, %v779_v2 }
 0x512   :  { %v785_v5 = vsub.f32 %v783_v4, %v784_v3 }
 0x514   :  { %v866_v6 = vmul.f32 -1.442695, %v785_v5 }
 0x516   :  { %1000 = vpow2.f32 %v866_v6 }
 0x520   :  { %v1001_v7 = vpop.eup %1000 }
 0x521   :  { %v789_v8 = vadd.f32 1.0, %v1001_v7 }
 0x523   :  { %1002 = vrcp.f32 %v789_v8 }
 0x52d   :  { %v1003_v9 = vpop.eup %1002 }
 0x52e   :  { %793 = vst.msk [vmem:[%s1372_s15] sm:$0xff] %vm792_vm11, %v1003_v9 }
 0x52f   :  { %798 = vsyncpa [#allocation6], 1 }
 0x530   :  { %799 = vsyncpa [#allocation8], 1 }

</bundles_post_ra>
